<compile_context>
chip_gen: v7x
topology: tpu7x:2x2x1
jax: 0.10.0
libtpu: 0.0.40
codegen_flags: <defaults>
</compile_context>

<pallas_src>
import jax
import jax.numpy as jnp
from jax.experimental import pallas as pl
from jax.experimental.pallas import tpu as pltpu


# ----------------------------------------------------------------------------
# Helpers (plain JAX glue, run in the wrapper)
# ----------------------------------------------------------------------------
def _round_up(x: int, m: int) -> int:
    return ((x + m - 1) // m) * m


def bilinear_matrix(out_size: int, in_size: int) -> jnp.ndarray:
    """(out_size, in_size) interpolation matrix for align_corners=True bilinear."""
    if out_size == 1:
        src = jnp.zeros((1,), jnp.float32)
    else:
        src = jnp.arange(out_size, dtype=jnp.float32) * (in_size - 1) / (out_size - 1)
    i0 = jnp.clip(jnp.floor(src), 0, in_size - 1).astype(jnp.int32)
    i1 = jnp.minimum(i0 + 1, in_size - 1)
    w1 = src - i0.astype(jnp.float32)
    w0 = 1.0 - w1
    oh0 = jax.nn.one_hot(i0, in_size, dtype=jnp.float32)
    oh1 = jax.nn.one_hot(i1, in_size, dtype=jnp.float32)
    return w0[:, None] * oh0 + w1[:, None] * oh1


def nearest_matrix(out_size: int, in_size: int) -> jnp.ndarray:
    """(out_size, in_size) one-hot selection matrix, nearest-neighbour using the
    same align_corners=True source-coordinate mapping as the image resize."""
    if out_size == 1:
        src = jnp.zeros((1,), jnp.float32)
    else:
        src = jnp.arange(out_size, dtype=jnp.float32) * (in_size - 1) / (out_size - 1)
    idx = jnp.clip(jnp.round(src), 0, in_size - 1).astype(jnp.int32)
    return jax.nn.one_hot(idx, in_size, dtype=jnp.float32)


# ----------------------------------------------------------------------------
# Fused Pallas kernel: normalize + bilinear resize (image) + nearest (mask)
# ----------------------------------------------------------------------------
def _fused_kernel(mean_ref, std_ref,            # SMEM (C,)
                  x_ref, ry_ref, rxT_ref,        # VMEM image path
                  mask_ref, sy_ref, sxT_ref,     # VMEM mask path
                  img_o_ref, mask_o_ref):        # outputs
    C, H, W = x_ref.shape
    Woutp = rxT_ref.shape[1]

    rxT = rxT_ref[...]                           # (W, Woutp)
    ry = ry_ref[...]                             # (Houtp, H)

    # ---- Column resize, fused over all channels (one large MXU matmul) ----
    #   (C*H, W) @ (W, Woutp) -> (C*H, Woutp)
    t = jnp.dot(x_ref[...].reshape(C * H, W), rxT,
                preferred_element_type=jnp.float32)
    t = t.reshape(C, H, Woutp)

    # ---- Row resize per channel + deferred per-channel normalization ------
    # Exact because every bilinear row sums to 1:
    #   resize((x - m)/s) == (resize(x) - m)/s
    for c in range(C):
        r = jnp.dot(ry, t[c], preferred_element_type=jnp.float32)   # (Houtp, Woutp)
        m = mean_ref[c]
        inv_s = 1.0 / std_ref[c]
        img_o_ref[c] = ((r - m) * inv_s).astype(img_o_ref.dtype)

    # ---- Mask: nearest-neighbour resize via exact one-hot matmuls (f32) ---
    mf = mask_ref[...].astype(jnp.float32)
    tm = jnp.dot(sy_ref[...], mf, preferred_element_type=jnp.float32)       # (Houtp, W)
    mask_o_ref[...] = jnp.dot(tm, sxT_ref[...],
                              preferred_element_type=jnp.float32).astype(mask_o_ref.dtype)


# ----------------------------------------------------------------------------
# Wrapper
# ----------------------------------------------------------------------------
def seg_data_augmentation(batch, mean, std, size):
    image = batch["image"]                      # (C, H, W) float32
    mask = batch["mask"]                        # (H, W)    float32
    C, H, W = image.shape
    Hout, Wout = size

    # Pad the output spatial dims to the (8, 128) tile grid so the kernel's
    # stores are lane-dense; slice the valid region afterwards.
    Houtp = _round_up(Hout, 8)
    Woutp = _round_up(Wout, 128)

    ry = jnp.zeros((Houtp, H), jnp.float32).at[:Hout, :].set(bilinear_matrix(Hout, H))
    rxT = jnp.zeros((W, Woutp), jnp.float32).at[:, :Wout].set(bilinear_matrix(Wout, W).T)
    sy = jnp.zeros((Houtp, H), jnp.float32).at[:Hout, :].set(nearest_matrix(Hout, H))
    sxT = jnp.zeros((W, Woutp), jnp.float32).at[:, :Wout].set(nearest_matrix(Wout, W).T)

    mean1 = mean.astype(jnp.float32).reshape(C)
    std1 = std.astype(jnp.float32).reshape(C)

    img_p, mask_p = pl.pallas_call(
        _fused_kernel,
        out_shape=(
            jax.ShapeDtypeStruct((C, Houtp, Woutp), image.dtype),
            jax.ShapeDtypeStruct((Houtp, Woutp), mask.dtype),
        ),
        grid=(1,),
        in_specs=[
            pl.BlockSpec(memory_space=pltpu.MemorySpace.SMEM),   # mean (C,)
            pl.BlockSpec(memory_space=pltpu.MemorySpace.SMEM),   # std  (C,)
            pl.BlockSpec((C, H, W), lambda i: (0, 0, 0)),        # image
            pl.BlockSpec((Houtp, H), lambda i: (0, 0)),          # ry
            pl.BlockSpec((W, Woutp), lambda i: (0, 0)),          # rxT
            pl.BlockSpec((H, W), lambda i: (0, 0)),              # mask
            pl.BlockSpec((Houtp, H), lambda i: (0, 0)),          # sy
            pl.BlockSpec((W, Woutp), lambda i: (0, 0)),          # sxT
        ],
        out_specs=(
            pl.BlockSpec((C, Houtp, Woutp), lambda i: (0, 0, 0)),
            pl.BlockSpec((Houtp, Woutp), lambda i: (0, 0)),
        ),
        compiler_params=pltpu.CompilerParams(
            dimension_semantics=("arbitrary",),
        ),
    )(mean1, std1, image, ry, rxT, mask, sy, sxT)

    x_out = img_p[:, :Hout, :Wout]
    mask_out = mask_p[:Hout, :Wout]
    return x_out, mask_out, batch["meta"]


# ----------------------------------------------------------------------------
# Demo
# ----------------------------------------------------------------------------
if __name__ == "__main__":
    key = jax.random.PRNGKey(0)
    k_img, k_mask = jax.random.split(key)

    C, H, W = 4, 16, 16
    size = (8, 8)

    image = jax.random.normal(k_img, (C, H, W), dtype=jnp.float32)
    mask = jax.random.randint(k_mask, (H, W), 0, 2).astype(jnp.float32)

    # deterministic "band stats" (module __init__ takes per-channel mean/std)
    mean = jnp.arange(1, C + 1, dtype=jnp.float32) * 0.1          # [0.1,0.2,0.3,0.4]
    std = jnp.arange(1, C + 1, dtype=jnp.float32) * 0.5 + 0.5     # [1.0,1.5,2.0,2.5]

    batch = {"image": image, "mask": mask, "meta": {"id": 0}}

    x_out, mask_out, meta = seg_data_augmentation(batch, mean, std, size)
    jax.block_until_ready((x_out, mask_out))

    assert x_out.shape == (C, size[0], size[1])
    assert mask_out.shape == (size[0], size[1])

    # Light numerical sanity check against a plain-JAX reference.
    ry_f = bilinear_matrix(size[0], H)
    rx_f = bilinear_matrix(size[1], W)
    xn_ref = (image - mean[:, None, None]) / std[:, None, None]
    img_ref = jnp.einsum("oh,chw,pw->cop", ry_f, xn_ref, rx_f,
                         precision=jax.lax.Precision.HIGHEST)
    assert jnp.allclose(x_out, img_ref, rtol=1e-2, atol=1e-2)

    idx_h = jnp.clip(jnp.round(jnp.arange(size[0]) * (H - 1) / (size[0] - 1)), 0, H - 1).astype(jnp.int32)
    idx_w = jnp.clip(jnp.round(jnp.arange(size[1]) * (W - 1) / (size[1] - 1)), 0, W - 1).astype(jnp.int32)
    mask_ref = mask[idx_h][:, idx_w]
    assert jnp.allclose(mask_out, mask_ref, atol=1e-5)

    print("KERNEL_OK")
</pallas_src>

<mosaic_0001>
module attributes {stable_mosaic.version = 11 : i64} {
  func.func @_fused_kernel(%arg0: i32, %arg1: memref<4xf32, #tpu.memory_space<smem>>, %arg2: memref<4xf32, #tpu.memory_space<smem>>, %arg3: memref<4x16x16xf32, #tpu.memory_space<vmem>>, %arg4: memref<8x16xf32, #tpu.memory_space<vmem>>, %arg5: memref<16x128xf32, #tpu.memory_space<vmem>>, %arg6: memref<16x16xf32, #tpu.memory_space<vmem>>, %arg7: memref<8x16xf32, #tpu.memory_space<vmem>>, %arg8: memref<16x128xf32, #tpu.memory_space<vmem>>, %arg9: memref<4x8x128xf32, #tpu.memory_space<vmem>>, %arg10: memref<8x128xf32, #tpu.memory_space<vmem>>) attributes {dimension_semantics = [#tpu.dimension_semantics<arbitrary>], iteration_bounds = array<i64: 1>, scalar_prefetch = 0 : i64, scratch_operands = 0 : i64, tpu.core_type = #tpu.core_type<tc>, window_params = [{transform_indices = @transform_0, window_bounds = array<i64: 4>}, {transform_indices = @transform_1, window_bounds = array<i64: 4>}, {pipeline_mode = #tpu.pipeline_mode<synchronous>, transform_indices = @transform_2, window_bounds = array<i64: 4, 16, 16>}, {pipeline_mode = #tpu.pipeline_mode<synchronous>, transform_indices = @transform_3, window_bounds = array<i64: 8, 16>}, {pipeline_mode = #tpu.pipeline_mode<synchronous>, transform_indices = @transform_4, window_bounds = array<i64: 16, 128>}, {pipeline_mode = #tpu.pipeline_mode<synchronous>, transform_indices = @transform_5, window_bounds = array<i64: 16, 16>}, {pipeline_mode = #tpu.pipeline_mode<synchronous>, transform_indices = @transform_6, window_bounds = array<i64: 8, 16>}, {pipeline_mode = #tpu.pipeline_mode<synchronous>, transform_indices = @transform_7, window_bounds = array<i64: 16, 128>}, {pipeline_mode = #tpu.pipeline_mode<synchronous>, transform_indices = @transform_8, window_bounds = array<i64: 4, 8, 128>}, {pipeline_mode = #tpu.pipeline_mode<synchronous>, transform_indices = @transform_9, window_bounds = array<i64: 8, 128>}]} {
    %c0 = arith.constant 0 : index
    %c0_0 = arith.constant 0 : index
    %0 = vector.load %arg5[%c0, %c0_0] : memref<16x128xf32, #tpu.memory_space<vmem>>, vector<16x128xf32>
    %c0_1 = arith.constant 0 : index
    %c0_2 = arith.constant 0 : index
    %1 = vector.load %arg4[%c0_1, %c0_2] : memref<8x16xf32, #tpu.memory_space<vmem>>, vector<8x16xf32>
    %c0_3 = arith.constant 0 : index
    %c0_4 = arith.constant 0 : index
    %c0_5 = arith.constant 0 : index
    %2 = vector.load %arg3[%c0_3, %c0_4, %c0_5] : memref<4x16x16xf32, #tpu.memory_space<vmem>>, vector<4x16x16xf32>
    %3 = vector.shape_cast %2 : vector<4x16x16xf32> to vector<64x16xf32>
    %cst = arith.constant dense<0.000000e+00> : vector<64x128xf32>
    %4 = tpu.matmul %3, %0, %cst {dimension_numbers = #tpu.dot_dimension_numbers<[1], [0], [0], [1], [0, 0, 1, 1], [], []>} : vector<64x16xf32>, vector<16x128xf32>, vector<64x128xf32> -> vector<64x128xf32>
    %5 = vector.shape_cast %4 : vector<64x128xf32> to vector<4x16x128xf32>
    %6 = vector.extract_strided_slice %5 {offsets = [0, 0, 0], sizes = [1, 16, 128], strides = [1, 1, 1]} : vector<4x16x128xf32> to vector<1x16x128xf32>
    %7 = vector.shape_cast %6 : vector<1x16x128xf32> to vector<16x128xf32>
    %cst_6 = arith.constant dense<0.000000e+00> : vector<8x128xf32>
    %8 = tpu.matmul %1, %7, %cst_6 {dimension_numbers = #tpu.dot_dimension_numbers<[1], [0], [0], [1], [0, 0, 1, 1], [], []>} : vector<8x16xf32>, vector<16x128xf32>, vector<8x128xf32> -> vector<8x128xf32>
    %c0_7 = arith.constant 0 : index
    %9 = memref.load %arg1[%c0_7] : memref<4xf32, #tpu.memory_space<smem>>
    %c0_8 = arith.constant 0 : index
    %10 = memref.load %arg2[%c0_8] : memref<4xf32, #tpu.memory_space<smem>>
    %cst_9 = arith.constant 1.000000e+00 : f32
    %11 = arith.divf %cst_9, %10 : f32
    %12 = vector.broadcast %9 : f32 to vector<8x128xf32>
    %13 = arith.subf %8, %12 : vector<8x128xf32>
    %14 = vector.broadcast %11 : f32 to vector<8x128xf32>
    %15 = arith.mulf %13, %14 : vector<8x128xf32>
    %c0_10 = arith.constant 0 : index
    %c0_11 = arith.constant 0 : index
    %c0_12 = arith.constant 0 : index
    %16 = vector.load %arg9[%c0_10, %c0_11, %c0_12] : memref<4x8x128xf32, #tpu.memory_space<vmem>>, vector<1x8x128xf32>
    %17 = vector.shape_cast %16 : vector<1x8x128xf32> to vector<8x128xf32>
    %18 = vector.shape_cast %15 : vector<8x128xf32> to vector<1x8x128xf32>
    tpu.vector_store %arg9[%c0_10, %c0_11, %c0_12], %18 {strides = array<i32>} : memref<4x8x128xf32, #tpu.memory_space<vmem>>, vector<1x8x128xf32>,
    %19 = vector.extract_strided_slice %5 {offsets = [1, 0, 0], sizes = [1, 16, 128], strides = [1, 1, 1]} : vector<4x16x128xf32> to vector<1x16x128xf32>
    %20 = vector.shape_cast %19 : vector<1x16x128xf32> to vector<16x128xf32>
    %cst_13 = arith.constant dense<0.000000e+00> : vector<8x128xf32>
    %21 = tpu.matmul %1, %20, %cst_13 {dimension_numbers = #tpu.dot_dimension_numbers<[1], [0], [0], [1], [0, 0, 1, 1], [], []>} : vector<8x16xf32>, vector<16x128xf32>, vector<8x128xf32> -> vector<8x128xf32>
    %c1 = arith.constant 1 : index
    %22 = memref.load %arg1[%c1] : memref<4xf32, #tpu.memory_space<smem>>
    %c1_14 = arith.constant 1 : index
    %23 = memref.load %arg2[%c1_14] : memref<4xf32, #tpu.memory_space<smem>>
    %cst_15 = arith.constant 1.000000e+00 : f32
    %24 = arith.divf %cst_15, %23 : f32
    %25 = vector.broadcast %22 : f32 to vector<8x128xf32>
    %26 = arith.subf %21, %25 : vector<8x128xf32>
    %27 = vector.broadcast %24 : f32 to vector<8x128xf32>
    %28 = arith.mulf %26, %27 : vector<8x128xf32>
    %c1_16 = arith.constant 1 : index
    %c0_17 = arith.constant 0 : index
    %c0_18 = arith.constant 0 : index
    %29 = vector.load %arg9[%c1_16, %c0_17, %c0_18] : memref<4x8x128xf32, #tpu.memory_space<vmem>>, vector<1x8x128xf32>
    %30 = vector.shape_cast %29 : vector<1x8x128xf32> to vector<8x128xf32>
    %31 = vector.shape_cast %28 : vector<8x128xf32> to vector<1x8x128xf32>
    tpu.vector_store %arg9[%c1_16, %c0_17, %c0_18], %31 {strides = array<i32>} : memref<4x8x128xf32, #tpu.memory_space<vmem>>, vector<1x8x128xf32>,
    %32 = vector.extract_strided_slice %5 {offsets = [2, 0, 0], sizes = [1, 16, 128], strides = [1, 1, 1]} : vector<4x16x128xf32> to vector<1x16x128xf32>
    %33 = vector.shape_cast %32 : vector<1x16x128xf32> to vector<16x128xf32>
    %cst_19 = arith.constant dense<0.000000e+00> : vector<8x128xf32>
    %34 = tpu.matmul %1, %33, %cst_19 {dimension_numbers = #tpu.dot_dimension_numbers<[1], [0], [0], [1], [0, 0, 1, 1], [], []>} : vector<8x16xf32>, vector<16x128xf32>, vector<8x128xf32> -> vector<8x128xf32>
    %c2 = arith.constant 2 : index
    %35 = memref.load %arg1[%c2] : memref<4xf32, #tpu.memory_space<smem>>
    %c2_20 = arith.constant 2 : index
    %36 = memref.load %arg2[%c2_20] : memref<4xf32, #tpu.memory_space<smem>>
    %cst_21 = arith.constant 1.000000e+00 : f32
    %37 = arith.divf %cst_21, %36 : f32
    %38 = vector.broadcast %35 : f32 to vector<8x128xf32>
    %39 = arith.subf %34, %38 : vector<8x128xf32>
    %40 = vector.broadcast %37 : f32 to vector<8x128xf32>
    %41 = arith.mulf %39, %40 : vector<8x128xf32>
    %c2_22 = arith.constant 2 : index
    %c0_23 = arith.constant 0 : index
    %c0_24 = arith.constant 0 : index
    %42 = vector.load %arg9[%c2_22, %c0_23, %c0_24] : memref<4x8x128xf32, #tpu.memory_space<vmem>>, vector<1x8x128xf32>
    %43 = vector.shape_cast %42 : vector<1x8x128xf32> to vector<8x128xf32>
    %44 = vector.shape_cast %41 : vector<8x128xf32> to vector<1x8x128xf32>
    tpu.vector_store %arg9[%c2_22, %c0_23, %c0_24], %44 {strides = array<i32>} : memref<4x8x128xf32, #tpu.memory_space<vmem>>, vector<1x8x128xf32>,
    %45 = vector.extract_strided_slice %5 {offsets = [3, 0, 0], sizes = [1, 16, 128], strides = [1, 1, 1]} : vector<4x16x128xf32> to vector<1x16x128xf32>
    %46 = vector.shape_cast %45 : vector<1x16x128xf32> to vector<16x128xf32>
    %cst_25 = arith.constant dense<0.000000e+00> : vector<8x128xf32>
    %47 = tpu.matmul %1, %46, %cst_25 {dimension_numbers = #tpu.dot_dimension_numbers<[1], [0], [0], [1], [0, 0, 1, 1], [], []>} : vector<8x16xf32>, vector<16x128xf32>, vector<8x128xf32> -> vector<8x128xf32>
    %c3 = arith.constant 3 : index
    %48 = memref.load %arg1[%c3] : memref<4xf32, #tpu.memory_space<smem>>
    %c3_26 = arith.constant 3 : index
    %49 = memref.load %arg2[%c3_26] : memref<4xf32, #tpu.memory_space<smem>>
    %cst_27 = arith.constant 1.000000e+00 : f32
    %50 = arith.divf %cst_27, %49 : f32
    %51 = vector.broadcast %48 : f32 to vector<8x128xf32>
    %52 = arith.subf %47, %51 : vector<8x128xf32>
    %53 = vector.broadcast %50 : f32 to vector<8x128xf32>
    %54 = arith.mulf %52, %53 : vector<8x128xf32>
    %c3_28 = arith.constant 3 : index
    %c0_29 = arith.constant 0 : index
    %c0_30 = arith.constant 0 : index
    %55 = vector.load %arg9[%c3_28, %c0_29, %c0_30] : memref<4x8x128xf32, #tpu.memory_space<vmem>>, vector<1x8x128xf32>
    %56 = vector.shape_cast %55 : vector<1x8x128xf32> to vector<8x128xf32>
    %57 = vector.shape_cast %54 : vector<8x128xf32> to vector<1x8x128xf32>
    tpu.vector_store %arg9[%c3_28, %c0_29, %c0_30], %57 {strides = array<i32>} : memref<4x8x128xf32, #tpu.memory_space<vmem>>, vector<1x8x128xf32>,
    %c0_31 = arith.constant 0 : index
    %c0_32 = arith.constant 0 : index
    %58 = vector.load %arg6[%c0_31, %c0_32] : memref<16x16xf32, #tpu.memory_space<vmem>>, vector<16x16xf32>
    %c0_33 = arith.constant 0 : index
    %c0_34 = arith.constant 0 : index
    %59 = vector.load %arg7[%c0_33, %c0_34] : memref<8x16xf32, #tpu.memory_space<vmem>>, vector<8x16xf32>
    %cst_35 = arith.constant dense<0.000000e+00> : vector<8x16xf32>
    %60 = tpu.matmul %59, %58, %cst_35 {dimension_numbers = #tpu.dot_dimension_numbers<[1], [0], [0], [1], [0, 0, 1, 1], [], []>} : vector<8x16xf32>, vector<16x16xf32>, vector<8x16xf32> -> vector<8x16xf32>
    %c0_36 = arith.constant 0 : index
    %c0_37 = arith.constant 0 : index
    %61 = vector.load %arg8[%c0_36, %c0_37] : memref<16x128xf32, #tpu.memory_space<vmem>>, vector<16x128xf32>
    %cst_38 = arith.constant dense<0.000000e+00> : vector<8x128xf32>
    %62 = tpu.matmul %60, %61, %cst_38 {dimension_numbers = #tpu.dot_dimension_numbers<[1], [0], [0], [1], [0, 0, 1, 1], [], []>} : vector<8x16xf32>, vector<16x128xf32>, vector<8x128xf32> -> vector<8x128xf32>
    %c0_39 = arith.constant 0 : index
    %c0_40 = arith.constant 0 : index
    %63 = vector.load %arg10[%c0_39, %c0_40] : memref<8x128xf32, #tpu.memory_space<vmem>>, vector<8x128xf32>
    tpu.vector_store %arg10[%c0_39, %c0_40], %62 {strides = array<i32>} : memref<8x128xf32, #tpu.memory_space<vmem>>, vector<8x128xf32>,
    return
  }
  func.func @transform_0(%arg0: i32) -> i32 {
    %c0_i32 = arith.constant 0 : i32
    %c0_i32_0 = arith.constant 0 : i32
    return %c0_i32 : i32
  }
  func.func @transform_1(%arg0: i32) -> i32 {
    %c0_i32 = arith.constant 0 : i32
    %c0_i32_0 = arith.constant 0 : i32
    return %c0_i32 : i32
  }
  func.func @transform_2(%arg0: i32) -> (i32, i32, i32) {
    %c0_i32 = arith.constant 0 : i32
    %c0_i32_0 = arith.constant 0 : i32
    %c0_i32_1 = arith.constant 0 : i32
    %c0_i32_2 = arith.constant 0 : i32
    return %c0_i32, %c0_i32_0, %c0_i32_1 : i32, i32, i32
  }
  func.func @transform_3(%arg0: i32) -> (i32, i32) {
    %c0_i32 = arith.constant 0 : i32
    %c0_i32_0 = arith.constant 0 : i32
    %c0_i32_1 = arith.constant 0 : i32
    return %c0_i32, %c0_i32_0 : i32, i32
  }
  func.func @transform_4(%arg0: i32) -> (i32, i32) {
    %c0_i32 = arith.constant 0 : i32
    %c0_i32_0 = arith.constant 0 : i32
    %c0_i32_1 = arith.constant 0 : i32
    return %c0_i32, %c0_i32_0 : i32, i32
  }
  func.func @transform_5(%arg0: i32) -> (i32, i32) {
    %c0_i32 = arith.constant 0 : i32
    %c0_i32_0 = arith.constant 0 : i32
    %c0_i32_1 = arith.constant 0 : i32
    return %c0_i32, %c0_i32_0 : i32, i32
  }
  func.func @transform_6(%arg0: i32) -> (i32, i32) {
    %c0_i32 = arith.constant 0 : i32
    %c0_i32_0 = arith.constant 0 : i32
    %c0_i32_1 = arith.constant 0 : i32
    return %c0_i32, %c0_i32_0 : i32, i32
  }
  func.func @transform_7(%arg0: i32) -> (i32, i32) {
    %c0_i32 = arith.constant 0 : i32
    %c0_i32_0 = arith.constant 0 : i32
    %c0_i32_1 = arith.constant 0 : i32
    return %c0_i32, %c0_i32_0 : i32, i32
  }
  func.func @transform_8(%arg0: i32) -> (i32, i32, i32) {
    %c0_i32 = arith.constant 0 : i32
    %c0_i32_0 = arith.constant 0 : i32
    %c0_i32_1 = arith.constant 0 : i32
    %c0_i32_2 = arith.constant 0 : i32
    return %c0_i32, %c0_i32_0, %c0_i32_1 : i32, i32, i32
  }
  func.func @transform_9(%arg0: i32) -> (i32, i32) {
    %c0_i32 = arith.constant 0 : i32
    %c0_i32_0 = arith.constant 0 : i32
    %c0_i32_1 = arith.constant 0 : i32
    return %c0_i32, %c0_i32_0 : i32, i32
  }
}

</mosaic_0001>

<bundles_post_ra>
// kernel: tpu_custom_call.1
= control target key start
LH: loop header
LB: loop body
LE: loop exit
PB: predicated region body
PF: predicated region fallthrough
CT: control target
= control target key end

     0   :  { %15 = vsyncpa [#allocation5], 0  ;;  %s1342_s0 = inlined_call_operand.hbm [shape: f32[4], index: 0, kind: input, shape index: {}]   ;;  %s1343_s1 = inlined_call_operand.vmem [shape: f32[4], index: 1, kind: input, shape index: {}]   ;;  %s1344_s2 = inlined_call_operand.hbm [shape: f32[4,16,16], index: 2, kind: input, shape index: {}]   ;;  %s1345_s3 = inlined_call_operand.hbm [shape: f32[8,16], index: 3, kind: input, shape index: {}]   ;;  %s1346_s4 = inlined_call_operand.hbm [shape: f32[16,128], index: 4, kind: input, shape index: {}]   ;;  %s1347_s5 = inlined_call_operand.vmem [shape: f32[16,16], index: 5, kind: input, shape index: {}]   ;;  %s1348_s6 = inlined_call_operand.hbm [shape: f32[8,16], index: 6, kind: input, shape index: {}]   ;;  %s1349_s7 = inlined_call_operand.hbm [shape: f32[16,128], index: 7, kind: input, shape index: {}]   ;;  %s1350_s8 = inlined_call_operand.hbm [shape: f32[4,8,128], index: 8, kind: output, shape index: {0}]   ;;  %s1351_s9 = inlined_call_operand.hbm [shape: f32[8,128], index: 9, kind: output, shape index: {1}]  }
   0x1   :  { %16 = vsyncpa [#allocation6], 0 }
   0x2   :  { %17 = vsyncpa [#allocation3], 0 }
   0x3   :  { %18 = vsyncpa [#allocation10], 0 }
   0x4   :  { %19 = vsyncpa [#allocation13], 0 }
   0x5   :  { %20 = vsyncpa [#allocation4], 0 }
   0x6   :  { %21 = vsyncpa [#allocation17], 0  ;;  %s1122_s30 = smov [#allocation9]   ;;  %s1123_s11 = smov [#allocation12]  }
   0x7   :  { %s58_s10 = sshll.u32 %s1122_s30, 4  ;;  %s82_s12 = sshll.u32 %s1123_s11, 4  ;;  %s59_s10 = int_to_ptr.vmem [resolvable:$true] %s58_s10  ;;  %s83_s12 = int_to_ptr.vmem [resolvable:$true] %s82_s12 }
   0x8   :  { %s932_s15 = scalar_lea.hbm %s1345_s3, 128 }
   0x9   :  { %p933_p0 = scmp.ne.s32.totalorder %s1345_s3, %s932_s15  ;;  %p936_p1 = scmp.lt.u32.totalorder %s932_s15, %s1345_s3 }
   0xb   :  { %p938_p2 = pnand %p936_p1, %p933_p0 }
   0xd   :  { %941 = shalt.err (!%p938_p2)
}
   0xe   :  { %s942_s20 = scalar_lea.vmem %s59_s10, 128  ;;  %p947_p4 = scmp.lt.s32.totalorder %s59_s10, %s59_s10 }
   0xf   :  { %p943_p3 = scmp.ne.s32.totalorder %s59_s10, %s942_s20  ;;  %p948_p5 = scmp.lt.s32.totalorder %s942_s20, %s942_s20 }
  0x11   :  { %p949_p6 = por %p948_p5, %p947_p4 }
  0x13   :  { %p950_p7 = pnand %p949_p6, %p943_p3 }
  0x15   :  { %953 = shalt.err (!%p950_p7)
}
  0x16   :  { %61 = dma.hbm_to_vmem [thread:$0]  %s1345_s3, 128, %s59_s10, [#allocation10]  }
  0x17   :  { %s954_s25 = scalar_lea.hbm %s1348_s6, 128 }
  0x18   :  { %p955_p8 = scmp.ne.s32.totalorder %s1348_s6, %s954_s25  ;;  %p958_p9 = scmp.lt.u32.totalorder %s954_s25, %s1348_s6 }
  0x1a   :  { %p960_p10 = pnand %p958_p9, %p955_p8 }
  0x1c   :  { %963 = shalt.err (!%p960_p10)
}
  0x1d   :  { %s964_s30 = scalar_lea.vmem %s83_s12, 128  ;;  %p969_p12 = scmp.lt.s32.totalorder %s83_s12, %s83_s12 }
  0x1e   :  { %p965_p11 = scmp.ne.s32.totalorder %s83_s12, %s964_s30  ;;  %p970_p13 = scmp.lt.s32.totalorder %s964_s30, %s964_s30 }
  0x20   :  { %p971_p0 = por %p970_p13, %p969_p12 }
  0x22   :  { %p972_p1 = pnand %p971_p0, %p965_p11 }
  0x24   :  { %975 = shalt.err (!%p972_p1)
}
  0x25   :  { %85 = dma.hbm_to_vmem [thread:$0]  %s1348_s6, 128, %s83_s12, [#allocation13]  }
  0x26   :  { %s36_s14 = sshll.u32 %s1343_s1, 4  ;;  %s976_s17 = scalar_lea.hbm %s1342_s0, 16  ;;  %s37_s14 = int_to_ptr.vmem [resolvable:$true] %s36_s14 }
  0x27   :  { %p977_p2 = scmp.ne.s32.totalorder %s1342_s0, %s976_s17  ;;  %p980_p3 = scmp.lt.u32.totalorder %s976_s17, %s1342_s0 }
  0x29   :  { %p982_p4 = pnand %p980_p3, %p977_p2 }
  0x2b   :  { %985 = shalt.err (!%p982_p4)
}
  0x2c   :  { %s1124_s22 = smov [#allocation2]   ;;  %s986_s1 = scalar_lea.vmem %s37_s14, 16 }
  0x2d   :  { %29 = dma.hbm_to_smem %s1342_s0, 16, %s1124_s22, [#allocation5]  }
  0x2e   :  { %p987_p5 = scmp.ne.s32.totalorder %s37_s14, %s986_s1  ;;  %p991_p6 = scmp.lt.s32.totalorder %s37_s14, %s37_s14 }
  0x2f   :  { %p992_p7 = scmp.lt.s32.totalorder %s986_s1, %s986_s1 }
  0x31   :  { %p993_p8 = por %p992_p7, %p991_p6 }
  0x33   :  { %p994_p9 = pnand %p993_p8, %p987_p5 }
  0x35   :  { %997 = shalt.err (!%p994_p9)
}
  0x36   :  { %s1125_s23 = smov [#allocation7]   ;;  %s1126_s24 = smov [#allocation8]  }
  0x37   :  { %39 = dma.vmem_to_smem %s37_s14, 16, %s1125_s23, [#allocation6]  }
  0x38   :  { %s45_s25 = sshll.u32 %s1126_s24, 4  ;;  %s998_s28 = scalar_lea.hbm %s1344_s2, 1024  ;;  %s46_s25 = int_to_ptr.vmem [resolvable:$true] %s45_s25 }
  0x39   :  { %p999_p10 = scmp.ne.s32.totalorder %s1344_s2, %s998_s28  ;;  %p1002_p11 = scmp.lt.u32.totalorder %s998_s28, %s1344_s2 }
  0x3b   :  { %p1004_p12 = pnand %p1002_p11, %p999_p10 }
  0x3d   :  { %1007 = shalt.err (!%p1004_p12)
}
  0x3e   :  { %s1008_s10 = scalar_lea.vmem %s46_s25, 1024  ;;  %p1013_p0 = scmp.lt.s32.totalorder %s46_s25, %s46_s25 }
  0x3f   :  { %p1009_p13 = scmp.ne.s32.totalorder %s46_s25, %s1008_s10  ;;  %p1014_p1 = scmp.lt.s32.totalorder %s1008_s10, %s1008_s10 }
  0x41   :  { %p1015_p2 = por %p1014_p1, %p1013_p0 }
  0x43   :  { %p1016_p3 = pnand %p1015_p2, %p1009_p13 }
  0x45   :  { %1019 = shalt.err (!%p1016_p3)
}
  0x46   :  { %s1127_s11 = smov 128   ;;  %s1128_s13 = smov 8  }
  0x47   :  { %51 = dma.hbm_to_vmem [thread:$0]  %s1344_s2, 1024, %s46_s25, [#allocation3], %s1127_s11, %s1127_s11, %s1128_s13  }
  0x48   :  { %s1129_s16 = smov [#allocation11]   ;;  %s1130_s18 = smov [#allocation14]  }
  0x49   :  { %s67_s17 = sshll.u32 %s1129_s16, 4  ;;  %s91_s19 = sshll.u32 %s1130_s18, 4  ;;  %s68_s17 = int_to_ptr.vmem [resolvable:$true] %s67_s17  ;;  %s92_s19 = int_to_ptr.vmem [resolvable:$true] %s91_s19 }
  0x4a   :  { %s1020_s22 = scalar_lea.hbm %s1346_s4, 256 }
  0x4b   :  { %p1021_p4 = scmp.ne.s32.totalorder %s1346_s4, %s1020_s22  ;;  %p1024_p5 = scmp.lt.u32.totalorder %s1020_s22, %s1346_s4 }
  0x4d   :  { %p1026_p6 = pnand %p1024_p5, %p1021_p4 }
  0x4f   :  { %1029 = shalt.err (!%p1026_p6)
}
  0x50   :  { %s1030_s2 = scalar_lea.vmem %s68_s17, 256  ;;  %p1035_p8 = scmp.lt.s32.totalorder %s68_s17, %s68_s17 }
  0x51   :  { %p1031_p7 = scmp.ne.s32.totalorder %s68_s17, %s1030_s2  ;;  %p1036_p9 = scmp.lt.s32.totalorder %s1030_s2, %s1030_s2 }
  0x53   :  { %p1037_p10 = por %p1036_p9, %p1035_p8 }
  0x55   :  { %p1038_p11 = pnand %p1037_p10, %p1031_p7 }
  0x57   :  { %1041 = shalt.err (!%p1038_p11)
}
  0x58   :  { %73 = dma.hbm_to_vmem [thread:$0]  %s1346_s4, 256, %s68_s17, [#allocation10], %s1127_s11, %s1127_s11, %s1128_s13  }
  0x59   :  { %s1042_s28 = scalar_lea.hbm %s1349_s7, 256 }
  0x5a   :  { %p1043_p12 = scmp.ne.s32.totalorder %s1349_s7, %s1042_s28  ;;  %p1046_p13 = scmp.lt.u32.totalorder %s1042_s28, %s1349_s7 }
  0x5c   :  { %p1048_p0 = pnand %p1046_p13, %p1043_p12 }
  0x5e   :  { %1051 = shalt.err (!%p1048_p0)
}
  0x5f   :  { %s1052_s10 = scalar_lea.vmem %s92_s19, 256  ;;  %p1057_p2 = scmp.lt.s32.totalorder %s92_s19, %s92_s19 }
  0x60   :  { %p1053_p1 = scmp.ne.s32.totalorder %s92_s19, %s1052_s10  ;;  %p1058_p3 = scmp.lt.s32.totalorder %s1052_s10, %s1052_s10 }
  0x62   :  { %p1059_p4 = por %p1058_p3, %p1057_p2 }
  0x64   :  { %p1060_p5 = pnand %p1059_p4, %p1053_p1 }
  0x66   :  { %1063 = shalt.err (!%p1060_p5)
}
  0x67   :  { %97 = dma.hbm_to_vmem [thread:$0]  %s1349_s7, 256, %s92_s19, [#allocation13], %s1127_s11, %s1127_s11, %s1128_s13  }
  0x68   :  { %1108 = dma.done.wait [#allocation5], 16  }
  0x69   :  { %1109 = vsyncadd [#allocation5], 4294967280 }
  0x6a   :  { %1110 = dma.done.wait [#allocation6], 16  }
  0x6b   :  { %1111 = vsyncadd [#allocation6], 4294967280 }
  0x6c   :  { %1112 = dma.done.wait [#allocation3], 1024  }
  0x6d   :  { %1113 = vsyncadd [#allocation3], 4294966272 }
  0x6e   :  { %1114 = dma.done.wait [#allocation10], 384  }
  0x6f   :  { %1115 = vsyncadd [#allocation10], 4294966912 }
  0x70   :  { %1116 = dma.done.wait [#allocation13], 384  }
  0x71   :  { %1117 = vsyncadd [#allocation13], 4294966912 }
  0x72   :  { %119 = sfence }
  0x73   :  { %v120_v0 = vld [vmem:[#allocation11] sm:$0xff]  ;;  %v121_v1 = vld [vmem:[#allocation11 + $0x8] sm:$0xff]  ;;  %v123_v2 = vld [vmem:[#allocation8] sm:$0xff]  ;;  %vm131_vm0 = vcmask 130048   ;;  %v1131_v4 = vmov 0.0|0.0   ;;  %vm1132_vm1 = vmmov 0  }
  0x74   :  { %v880_v3 = vpack.c.bf16 %v121_v1, %v120_v0  ;;  %826 = vmatprep.mubr.msk.f32.mxu0 %vm131_vm0, %v123_v2  ;;  %884 = vmatprep.subr.bf16.mxu1 %v1131_v4  ;;  %v587_v5 = vld [vmem:[%s1347_s5] sm:$0xff]  ;;  %v588_v6 = vld [vmem:[%s1347_s5 + $0x8] sm:$0xff]  ;;  %v1133_v7 = vmov 0.0   ;;  %v124_v8 = vld [vmem:[#allocation8 + $0x8] sm:$0xff]  ;;  %s335_s5 = sld [smem:[#allocation7]]  ;;  %s785_s18 = sld [smem:[#allocation7 + $0x1]] }
  0x75   :  { %842 = vmatprep.mubr.msk.f32.mxu1 %vm1132_vm1, %v1133_v7  ;;  %v897_v9 = vpack.c.bf16 %v588_v6, %v587_v5  ;;  %v125_v10 = vld [vmem:[#allocation8 + $0x10] sm:$0xff]  ;;  %v126_v11 = vld [vmem:[#allocation8 + $0x18] sm:$0xff]  ;;  %v127_v12 = vld [vmem:[#allocation8 + $0x20] sm:$0xff]  ;;  %s788_s19 = sld [smem:[#allocation7 + $0x2]]  ;;  %s791_s20 = sld [smem:[#allocation7 + $0x3]] }
  0x76   :  { %881 = vmatprep.subr.bf16.mxu0 %v880_v3  ;;  %v128_v13 = vld [vmem:[#allocation8 + $0x28] sm:$0xff]  ;;  %v129_v14 = vld [vmem:[#allocation8 + $0x30] sm:$0xff]  ;;  %v130_v15 = vld [vmem:[#allocation8 + $0x38] sm:$0xff]  ;;  %s334_s21 = sld [smem:[#allocation2]]  ;;  %s784_s22 = sld [smem:[#allocation2 + $0x1]] }
  0x77   :  { %883 = vmatpush3.bf16.msra.mxu0 %v880_v3  ;;  %v589_v16 = vld [vmem:[#allocation12] sm:$0xff]  ;;  %v122_v29 = vld [vmem:[#allocation9] sm:$0xff]  ;;  %v664_v38 = vld [vmem:[#allocation14 + $0x8] sm:$0xff]  ;;  %s787_s12 = sld [smem:[#allocation2 + $0x2]]  ;;  %s790_s23 = sld [smem:[#allocation2 + $0x3]] }
  0x78   :  { %896 = vmatprep.subr.bf16.mxu0 %v1131_v4  ;;  %v663_v37 = vld [vmem:[#allocation14] sm:$0xff]  ;;  %s1134_s25 = smov [#allocation15]   ;;  %s1135_s27 = smov [#allocation16]  }
  0x79   :  { %v900_v40 = vpack.c.bf16 %v664_v38, %v663_v37  ;;  %s744_s26 = sshll.u32 %s1134_s25, 4  ;;  %s757_s28 = sshll.u32 %s1135_s27, 4  ;;  %s745_s26 = int_to_ptr.vmem [resolvable:$true] %s744_s26  ;;  %s1308_s28 = int_to_ptr.vmem [resolvable:$true] %s757_s28 }
  0x7a   :  { %827 = vmatmul.mubr.msk.f32.vlgmr.msra.gmra.mrb[0].mxu0 %vm131_vm0, %v124_v8  ;;  %v336_v17 = vstv %s335_s5  ;;  %v416_v18 = vstv %s785_s18  ;;  %s1064_s29 = scalar_lea.vmem %s745_s26, 512  ;;  %p1069_p7 = scmp.lt.s32.totalorder %s745_s26, %s745_s26 }
  0x7b   :  { %829 = vmatprep.mubr.msk.f32.mxu0 %vm131_vm0, %v125_v10  ;;  %898 = vmatpush3.bf16.msra.mxu0 %v897_v9  ;;  %924 = vrcp.f32 %v336_v17  ;;  %v497_v19 = vstv %s788_s19  ;;  %v578_v20 = vstv %s791_s20  ;;  %p1065_p6 = scmp.ne.s32.totalorder %s745_s26, %s1064_s29  ;;  %p1070_p8 = scmp.lt.s32.totalorder %s1064_s29, %s1064_s29 }
  0x7c   :  { %926 = vrcp.f32 %v416_v18  ;;  %v339_v43 = vstv %s334_s21  ;;  %v419_v48 = vstv %s784_s22 }
  0x7d   :  { %928 = vrcp.f32 %v497_v19  ;;  %v500_v54 = vstv %s787_s12  ;;  %v581_v60 = vstv %s790_s23  ;;  %p1071_p9 = por %p1070_p8, %p1069_p7 }
  0x7e   :  { %830 = vmatmul.mubr.msk.f32.gmra.mrb[2].mxu0 %vm131_vm0, %v126_v11  ;;  %930 = vrcp.f32 %v578_v20 }
  0x7f   :  { %832 = vmatprep.mubr.msk.f32.mxu0 %vm131_vm0, %v127_v12  ;;  %p1072_p10 = pnand %p1071_p9, %p1065_p6 }
  0x82   :  { %833 = vmatmul.mubr.msk.f32.gmra.mrb[4].mxu0 %vm131_vm0, %v128_v13 }
  0x83   :  { %835 = vmatprep.mubr.msk.f32.mxu0 %vm131_vm0, %v129_v14 }
  0x85   :  { %v925_v21 = vpop.eup %924 }
  0x86   :  { %836 = vmatmul.mubr.msk.f32.gmra.mrb[6].mxu0 %vm131_vm0, %v130_v15  ;;  %v927_v22 = vpop.eup %926  ;;  %902 = vpush %v925_v21 }
  0x87   :  { %870 = vmatprep.mubr.msk.f32.mxu0 %vm1132_vm1, %v1133_v7  ;;  %v929_v23 = vpop.eup %928  ;;  %904 = vpush %v927_v22 }
  0x88   :  { %v931_v24 = vpop.eup %930  ;;  %906 = vpush %v929_v23 }
  0x89   :  { %908 = vpush %v931_v24 }
  0x8a   :  { %871 = vmatmul.mubr.msk.f32.vlgmr.msra.gmra.mrb[8].mxu0 %vm131_vm0, %v589_v16 }
  0xb7   :  { %s903_s6 = spop %902 }
  0xb8   :  { %v341_v45 = vstv %s903_s6  ;;  %s905_s1 = spop %904 }
  0xb9   :  { %v421_v51 = vstv %s905_s1  ;;  %s907_s2 = spop %906 }
  0xba   :  { %v502_v57 = vstv %s907_s2  ;;  %s909_s24 = spop %908 }
  0xbb   :  { %v583_v63 = vstv %s909_s24 }
 0x14d   :  { %v828_v25 = vpop.f32.mrb[0].mxu0 }
 0x14e   :  { %v222_v26 = vpop.f32.mrb[1].mxu0 }
 0x14f   :  { %v885_v27 = vpack.c.bf16 %v828_v25, %v222_v26 }
 0x151   :  { %v831_v28 = vpop.f32.mrb[2].mxu0  ;;  %886 = vmatpush3.bf16.msra.mxu1 %v885_v27 }
 0x152   :  { %v232_v30 = vpop.f32.mrb[3].mxu0  ;;  %887 = vmatprep.subr.bf16.mxu1 %v1131_v4 }
 0x153   :  { %v888_v31 = vpack.c.bf16 %v831_v28, %v232_v30 }
 0x154   :  { %843 = vmatmul.mubr.msk.f32.vlgmr.msra.gmra.mrb[0].mxu1 %vm131_vm0, %v122_v29 }
 0x155   :  { %v834_v32 = vpop.f32.mrb[4].mxu0  ;;  %889 = vmatpush3.bf16.msra.mxu1 %v888_v31  ;;  %849 = vmatprep.mubr.msk.f32.mxu1 %vm1132_vm1, %v1133_v7 }
 0x156   :  { %v242_v33 = vpop.f32.mrb[5].mxu0  ;;  %890 = vmatprep.subr.bf16.mxu1 %v1131_v4 }
 0x157   :  { %v891_v34 = vpack.c.bf16 %v834_v32, %v242_v33 }
 0x158   :  { %850 = vmatmul.mubr.msk.f32.vlgmr.msra.gmra.mrb[2].mxu1 %vm131_vm0, %v122_v29 }
 0x159   :  { %v837_v35 = vpop.f32.mrb[6].mxu0  ;;  %892 = vmatpush3.bf16.msra.mxu1 %v891_v34  ;;  %856 = vmatprep.mubr.msk.f32.mxu1 %vm1132_vm1, %v1133_v7 }
 0x15a   :  { %v252_v36 = vpop.f32.mrb[7].mxu0  ;;  %893 = vmatprep.subr.bf16.mxu1 %v1131_v4 }
 0x15b   :  { %v894_v39 = vpack.c.bf16 %v837_v35, %v252_v36 }
 0x15c   :  { %857 = vmatmul.mubr.msk.f32.vlgmr.msra.gmra.mrb[4].mxu1 %vm131_vm0, %v122_v29 }
 0x15d   :  { %895 = vmatpush3.bf16.msra.mxu1 %v894_v39  ;;  %863 = vmatprep.mubr.msk.f32.mxu1 %vm1132_vm1, %v1133_v7  ;;  %v659_v41 = vpop.f32.mrb[8].mxu0 }
 0x15e   :  { %899 = vmatprep.subr.bf16.mxu1 %v1131_v4  ;;  %v872_v42 = vpop.f32.mrb[9].mxu0 }
 0x160   :  { %864 = vmatmul.mubr.msk.f32.vlgmr.msra.gmra.mrb[6].mxu1 %vm131_vm0, %v122_v29 }
 0x161   :  { %901 = vmatpush3.bf16.msra.mxu1 %v900_v40  ;;  %877 = vmatprep.mubr.msk.f32.mxu1 %vm1132_vm1, %v1133_v7 }
 0x164   :  { %878 = vmatmul.mubr.msk.f32.vlgmr.msra.gmra.mrb[8].mxu1 %vm131_vm0, %v659_v41 }
 0x227   :  { %v330_v44 = vpop.f32.mrb[0].mxu1 }
 0x228   :  { %v340_v46 = vsub.f32 %v330_v44, %v339_v43  ;;  %v844_v47 = vpop.f32.mrb[1].mxu1 }
 0x22a   :  { %v342_v49 = vmul.f32 %v341_v45, %v340_v46 }
 0x22b   :  { %v410_v50 = vpop.f32.mrb[2].mxu1 }
 0x22c   :  { %343 = vst [vmem:[#allocation15] sm:$0xff] %v342_v49  ;;  %v420_v52 = vsub.f32 %v410_v50, %v419_v48  ;;  %v851_v53 = vpop.f32.mrb[3].mxu1 }
 0x22e   :  { %v422_v55 = vmul.f32 %v421_v51, %v420_v52 }
 0x22f   :  { %v491_v56 = vpop.f32.mrb[4].mxu1 }
 0x230   :  { %424 = vst [vmem:[#allocation15 + $0x8] sm:$0xff] %v422_v55  ;;  %v501_v58 = vsub.f32 %v491_v56, %v500_v54  ;;  %v858_v59 = vpop.f32.mrb[5].mxu1 }
 0x232   :  { %v503_v61 = vmul.f32 %v502_v57, %v501_v58 }
 0x233   :  { %v572_v62 = vpop.f32.mrb[6].mxu1 }
 0x234   :  { %505 = vst [vmem:[#allocation15 + $0x10] sm:$0xff] %v503_v61  ;;  %v582_v0 = vsub.f32 %v572_v62, %v581_v60  ;;  %v865_v1 = vpop.f32.mrb[7].mxu1 }
 0x236   :  { %v584_v2 = vmul.f32 %v583_v63, %v582_v0 }
 0x237   :  { %v734_v3 = vpop.f32.mrb[8].mxu1 }
 0x238   :  { %586 = vst [vmem:[#allocation15 + $0x18] sm:$0xff] %v584_v2  ;;  %738 = vst [vmem:[#allocation16] sm:$0xff] %v734_v3  ;;  %v879_v4 = vpop.f32.mrb[9].mxu1 }
 0x239   :  { %1075 = shalt.err (!%p1072_p10)
}
 0x23a   :  { %s1076_s3 = scalar_lea.hbm %s1350_s8, 512 }
 0x23b   :  { %p1077_p11 = scmp.ne.s32.totalorder %s1350_s8, %s1076_s3  ;;  %p1080_p12 = scmp.lt.u32.totalorder %s1076_s3, %s1350_s8 }
 0x23d   :  { %p1082_p13 = pnand %p1080_p12, %p1077_p11 }
 0x23f   :  { %1085 = shalt.err (!%p1082_p13)
}
 0x240   :  { %750 = dma.vmem_to_hbm [thread:$0]  %s745_s26, 512, %s1350_s8, [#allocation4], %s1127_s11, %s1127_s11, %s1128_s13  }
 0x241   :  { %s1086_s17 = scalar_lea.vmem %s1308_s28, 128  ;;  %p1091_p1 = scmp.lt.s32.totalorder %s1308_s28, %s1308_s28 }
 0x242   :  { %p1087_p0 = scmp.ne.s32.totalorder %s1308_s28, %s1086_s17  ;;  %p1092_p2 = scmp.lt.s32.totalorder %s1086_s17, %s1086_s17 }
 0x244   :  { %p1093_p3 = por %p1092_p2, %p1091_p1 }
 0x246   :  { %p1094_p4 = pnand %p1093_p3, %p1087_p0 }
 0x248   :  { %1097 = shalt.err (!%p1094_p4)
}
 0x249   :  { %s1098_s19 = scalar_lea.hbm %s1351_s9, 128 }
 0x24a   :  { %p1099_p5 = scmp.ne.s32.totalorder %s1351_s9, %s1098_s19  ;;  %p1102_p6 = scmp.lt.u32.totalorder %s1098_s19, %s1351_s9 }
 0x24c   :  { %p1104_p7 = pnand %p1102_p6, %p1099_p5 }
 0x24e   :  { %1107 = shalt.err (!%p1104_p7)
}
 0x24f   :  { %760 = dma.vmem_to_hbm [thread:$0]  %s1308_s28, 128, %s1351_s9, [#allocation17]  }
 0x250   :  { %1118 = dma.done.wait [#allocation4], 512  }
 0x251   :  { %1119 = vsyncadd [#allocation4], 4294966784 }
 0x252   :  { %1120 = dma.done.wait [#allocation17], 128  }
 0x253   :  { %1121 = vsyncadd [#allocation17], 4294967168 }
 0x254   :  { %767 = vsyncpa [#allocation3], 1 }
 0x255   :  { %768 = vsyncpa [#allocation10], 1 }
 0x256   :  { %769 = vsyncpa [#allocation13], 1 }
 0x257   :  { %770 = vsyncpa [#allocation4], 1 }
 0x258   :  { %771 = vsyncpa [#allocation17], 1 }
 0x259   :  { %772 = vsyncpa [#allocation5], 1 }
 0x25a   :  { %773 = vsyncpa [#allocation6], 1 }

</bundles_post_ra>
